<compile_context>
chip_gen: v5e
topology: v5e:2x2
jax: 0.10.0
libtpu: 0.0.40
codegen_flags: <defaults>
</compile_context>

<pallas_src>
import math
import numpy as np
import jax
import jax.numpy as jnp
from jax import lax
from jax.experimental import pallas as pl
from jax.experimental.pallas import tpu as pltpu

# ---- module hyper-parameters (small, deterministic test config) ----
C1 = 4          # input channels == attention sequence length
C2 = 8          # output channels
POOL = 3        # adaptive pool output size
DIM = 16        # attention embedding dim
HEAD = 2        # number of attention heads
HEAD_DIM = DIM // HEAD
P2 = POOL * POOL


# --------------------------------------------------------------------------
# Fused kernel: adaptive avg+max pool -> (qkv∘in_proj) -> MHA ->
#               (out_proj∘weight Linear) -> y = weight^T @ x
# --------------------------------------------------------------------------
def fused_kernel(x_ref, binmask_ref, invcnt_ref, wqkv_ref, bqkv_ref,
                 wow_ref, bow_ref, y_ref, weight_ref):
    x = x_ref[0]                                                   # (C1, HW)
    binmask = binmask_ref[...]                                     # (P2, HW)

    # ---- adaptive avg pool: one MXU contraction over HW + per-bin scale ----
    sums = lax.dot_general(x, binmask, (((1,), (1,)), ((), ())),
                           preferred_element_type=jnp.float32)     # (C1, P2)
    avg = sums * invcnt_ref[...]                                   # (C1, P2)

    # ---- adaptive max pool: additive neg-mask + one lane reduce ----
    # neg is 0 inside a bin, -1e30 outside (every bin is non-empty by
    # construction, so no -inf/NaN edge cases).
    neg = (binmask - 1.0) * jnp.float32(1e30)                      # (P2, HW)
    masked = x[:, None, :] + neg[None, :, :]                       # (C1, P2, HW)
    mx = jnp.max(masked, axis=-1)                                  # (C1, P2)

    x12 = jnp.concatenate([avg, mx], axis=-1)                      # (C1, 2*P2)

    # ---- attention with host-pre-composed (qkv Linear ∘ MHA in_proj) ----
    q1 = jnp.dot(x12, wqkv_ref[0], preferred_element_type=jnp.float32) + bqkv_ref[0]
    k1 = jnp.dot(x12, wqkv_ref[1], preferred_element_type=jnp.float32) + bqkv_ref[1]
    v1 = jnp.dot(x12, wqkv_ref[2], preferred_element_type=jnp.float32) + bqkv_ref[2]

    scale = jnp.float32(1.0 / math.sqrt(HEAD_DIM))
    heads = []
    for h in range(HEAD):
        sl = slice(h * HEAD_DIM, (h + 1) * HEAD_DIM)
        qh = q1[:, sl] * scale                                     # (C1, HD)
        kh = k1[:, sl]
        vh = v1[:, sl]
        # q @ k^T without an explicit transpose
        s = lax.dot_general(qh, kh, (((1,), (1,)), ((), ())),
                            preferred_element_type=jnp.float32)    # (C1, C1)
        s = s - jnp.max(s, axis=-1, keepdims=True)
        p = jnp.exp(s)
        p = p / jnp.sum(p, axis=-1, keepdims=True)
        heads.append(jnp.dot(p, vh, preferred_element_type=jnp.float32))
    attn = jnp.concatenate(heads, axis=-1)                         # (C1, DIM)

    # ---- host-pre-composed (MHA out_proj ∘ weight Linear) ----
    w = jnp.dot(attn, wow_ref[...], preferred_element_type=jnp.float32) \
        + bow_ref[...]                                             # (C1, C2)
    weight_ref[0] = w

    # ---- apply: y[b] = weight^T @ x[b], contracting over C1 directly ----
    y_ref[0] = lax.dot_general(w, x, (((0,), (0,)), ((), ())),
                               preferred_element_type=jnp.float32)  # (C2, HW)


def channel_attention2d_forward(x, bin_mask, inv_cnt, kp):
    B, C, H, W = x.shape
    assert C == C1
    HW = H * W
    x_flat = x.reshape(B, C, HW).astype(jnp.float32)
    y_flat, weight = pl.pallas_call(
        fused_kernel,
        out_shape=(jax.ShapeDtypeStruct((B, C2, HW), jnp.float32),
                   jax.ShapeDtypeStruct((B, C1, C2), jnp.float32)),
        grid=(B,),
        in_specs=[
            pl.BlockSpec((1, C1, HW), lambda b: (b, 0, 0)),        # x slab
            pl.BlockSpec((P2, HW), lambda b: (0, 0)),              # bin mask
            pl.BlockSpec((1, P2), lambda b: (0, 0)),               # inv counts
            pl.BlockSpec((3, 2 * P2, DIM), lambda b: (0, 0, 0)),   # fused qkv
            pl.BlockSpec((3, 1, DIM), lambda b: (0, 0, 0)),
            pl.BlockSpec((DIM, C2), lambda b: (0, 0)),             # fused out
            pl.BlockSpec((1, C2), lambda b: (0, 0)),
        ],
        out_specs=(pl.BlockSpec((1, C2, HW), lambda b: (b, 0, 0)),
                   pl.BlockSpec((1, C1, C2), lambda b: (b, 0, 0))),
        compiler_params=pltpu.CompilerParams(dimension_semantics=("parallel",)),
    )(x_flat, bin_mask, inv_cnt, kp["wqkv_t"], kp["bqkv"],
      kp["wow_t"], kp["bow"])
    return y_flat.reshape(B, C2, H, W), weight


# --------------------------------------------------------------------------
# Glue: adaptive-pool geometry, parameter setup (host-side algebraic fusion)
# --------------------------------------------------------------------------
def adaptive_bins(n, p):
    starts = [(i * n) // p for i in range(p)]
    ends = [-(-((i + 1) * n) // p) for i in range(p)]   # ceil division
    return starts, ends


def build_pool_mats(H, W):
    hs, he = adaptive_bins(H, POOL)
    ws, we = adaptive_bins(W, POOL)
    HW = H * W
    bin_mask = np.zeros((P2, HW), dtype=np.float32)
    inv_cnt = np.zeros((1, P2), dtype=np.float32)
    for i in range(POOL):
        for j in range(POOL):
            idx = i * POOL + j
            cnt = (he[i] - hs[i]) * (we[j] - ws[j])
            inv_cnt[0, idx] = 1.0 / cnt
            for h in range(hs[i], he[i]):
                for w in range(ws[j], we[j]):
                    bin_mask[idx, h * W + w] = 1.0
    return jnp.asarray(bin_mask), jnp.asarray(inv_cnt)


def init_raw_params(key):
    ks = jax.random.split(key, 8)
    Wqkv = 0.1 * jax.random.normal(ks[0], (3 * DIM, 2 * P2), jnp.float32)
    bqkv = 0.1 * jax.random.normal(ks[1], (3 * DIM,), jnp.float32)
    Wip = 0.1 * jax.random.normal(ks[2], (3 * DIM, DIM), jnp.float32)
    bip = 0.1 * jax.random.normal(ks[3], (3 * DIM,), jnp.float32)
    Wo = 0.1 * jax.random.normal(ks[4], (DIM, DIM), jnp.float32)
    bo = 0.1 * jax.random.normal(ks[5], (DIM,), jnp.float32)
    Ww = 0.1 * jax.random.normal(ks[6], (C2, DIM), jnp.float32)
    bw = 0.1 * jax.random.normal(ks[7], (C2,), jnp.float32)
    return Wqkv, bqkv, Wip, bip, Wo, bo, Ww, bw


def prep_kernel_params(raw):
    """Pre-compose consecutive Linear layers on host (exact algebra)."""
    Wqkv, bqkv, Wip, bip, Wo, bo, Ww, bw = raw
    # qkv Linear: reshape(..., DIM, 3) means q/k/v are interleaved output cols
    Wq0, Wk0, Wv0 = Wqkv[0::3], Wqkv[1::3], Wqkv[2::3]      # (DIM, 2*P2)
    bq0, bk0, bv0 = bqkv[0::3], bqkv[1::3], bqkv[2::3]      # (DIM,)
    # MHA in_proj is chunked q/k/v
    Wiq, Wik, Wiv = Wip[:DIM], Wip[DIM:2 * DIM], Wip[2 * DIM:]
    biq, bik, biv = bip[:DIM], bip[DIM:2 * DIM], bip[2 * DIM:]

    def fuse(W0, b0, Wi, bi):
        Wf = Wi @ W0                      # (DIM, 2*P2)
        bf = b0 @ Wi.T + bi               # (DIM,)
        return Wf.T, bf[None, :]          # (2*P2, DIM), (1, DIM)

    wq_t, bq = fuse(Wq0, bq0, Wiq, biq)
    wk_t, bk = fuse(Wk0, bk0, Wik, bik)
    wv_t, bv = fuse(Wv0, bv0, Wiv, biv)
    wqkv_t = jnp.stack([wq_t, wk_t, wv_t])                  # (3, 2*P2, DIM)
    bqkv_s = jnp.stack([bq, bk, bv])                        # (3, 1, DIM)

    # fold MHA out_proj into the weight Linear
    Wow = Ww @ Wo                                           # (C2, DIM)
    bow = bo @ Ww.T + bw                                    # (C2,)
    return dict(wqkv_t=wqkv_t, bqkv=bqkv_s,
                wow_t=Wow.T, bow=bow[None, :])


# --------------------------------------------------------------------------
# Pure-JAX reference (mirrors the PyTorch forward semantics, uses RAW params)
# --------------------------------------------------------------------------
def reference_forward(x, raw):
    Wqkv, bqkv, Wip, bip, Wo, bo, Ww, bw = raw
    B, C, H, W = x.shape
    hs, he = adaptive_bins(H, POOL)
    ws, we = adaptive_bins(W, POOL)
    avgs, maxs = [], []
    for i in range(POOL):
        for j in range(POOL):
            patch = x[:, :, hs[i]:he[i], ws[j]:we[j]]
            avgs.append(jnp.mean(patch, axis=(2, 3)))
            maxs.append(jnp.max(patch, axis=(2, 3)))
    x12 = jnp.concatenate([jnp.stack(avgs, -1), jnp.stack(maxs, -1)], axis=-1)
    qkv = (x12 @ Wqkv.T + bqkv).reshape(B, C1, DIM, 3)
    q, k, v = qkv[..., 0], qkv[..., 1], qkv[..., 2]
    q1 = q @ Wip[:DIM].T + bip[:DIM]
    k1 = k @ Wip[DIM:2 * DIM].T + bip[DIM:2 * DIM]
    v1 = v @ Wip[2 * DIM:].T + bip[2 * DIM:]

    def split_heads(t):
        return t.reshape(B, C1, HEAD, HEAD_DIM).transpose(0, 2, 1, 3)

    qh = split_heads(q1) / math.sqrt(HEAD_DIM)
    kh, vh = split_heads(k1), split_heads(v1)
    p = jax.nn.softmax(qh @ kh.transpose(0, 1, 3, 2), axis=-1)
    o = (p @ vh).transpose(0, 2, 1, 3).reshape(B, C1, DIM)
    res = o @ Wo.T + bo
    weight = res @ Ww.T + bw
    y = jnp.einsum('bchw,bcd->bdhw', x, weight)
    return y, weight


if __name__ == "__main__":
    B, H, W = 2, 16, 16
    key = jax.random.PRNGKey(0)
    kx, kp = jax.random.split(key)
    x = jax.random.normal(kx, (B, C1, H, W), jnp.float32)

    raw = init_raw_params(kp)
    kernel_params = prep_kernel_params(raw)
    bin_mask, inv_cnt = build_pool_mats(H, W)

    y, weight = channel_attention2d_forward(x, bin_mask, inv_cnt, kernel_params)
    y = jax.block_until_ready(y)
    weight = jax.block_until_ready(weight)

    y_ref, w_ref = reference_forward(x, raw)
    assert y.shape == (B, C2, H, W) and weight.shape == (B, C1, C2)
    assert bool(jnp.allclose(weight, w_ref, rtol=5e-2, atol=1e-2))
    assert bool(jnp.allclose(y, y_ref, rtol=5e-2, atol=1e-2))
    print("KERNEL_OK")
</pallas_src>

<mosaic_0001>
module attributes {stable_mosaic.version = 11 : i64} {
  func.func @fused_kernel(%arg0: i32, %arg1: memref<1x4x256xf32, #tpu.memory_space<vmem>>, %arg2: memref<9x256xf32, #tpu.memory_space<vmem>>, %arg3: memref<1x9xf32, #tpu.memory_space<vmem>>, %arg4: memref<3x18x16xf32, #tpu.memory_space<vmem>>, %arg5: memref<3x1x16xf32, #tpu.memory_space<vmem>>, %arg6: memref<16x8xf32, #tpu.memory_space<vmem>>, %arg7: memref<1x8xf32, #tpu.memory_space<vmem>>, %arg8: memref<1x8x256xf32, #tpu.memory_space<vmem>>, %arg9: memref<1x4x8xf32, #tpu.memory_space<vmem>>) attributes {dimension_semantics = [#tpu.dimension_semantics<parallel>], iteration_bounds = array<i64: 2>, scalar_prefetch = 0 : i64, scratch_operands = 0 : i64, tpu.core_type = #tpu.core_type<tc>, window_params = [{transform_indices = @transform_0, window_bounds = array<i64: 1, 4, 256>}, {pipeline_mode = #tpu.pipeline_mode<synchronous>, transform_indices = @transform_1, window_bounds = array<i64: 9, 256>}, {pipeline_mode = #tpu.pipeline_mode<synchronous>, transform_indices = @transform_2, window_bounds = array<i64: 1, 9>}, {pipeline_mode = #tpu.pipeline_mode<synchronous>, transform_indices = @transform_3, window_bounds = array<i64: 3, 18, 16>}, {pipeline_mode = #tpu.pipeline_mode<synchronous>, transform_indices = @transform_4, window_bounds = array<i64: 3, 1, 16>}, {pipeline_mode = #tpu.pipeline_mode<synchronous>, transform_indices = @transform_5, window_bounds = array<i64: 16, 8>}, {pipeline_mode = #tpu.pipeline_mode<synchronous>, transform_indices = @transform_6, window_bounds = array<i64: 1, 8>}, {transform_indices = @transform_7, window_bounds = array<i64: 1, 8, 256>}, {transform_indices = @transform_8, window_bounds = array<i64: 1, 4, 8>}]} {
    %c0 = arith.constant 0 : index
    %c0_0 = arith.constant 0 : index
    %c0_1 = arith.constant 0 : index
    %0 = vector.load %arg1[%c0, %c0_0, %c0_1] : memref<1x4x256xf32, #tpu.memory_space<vmem>>, vector<1x4x256xf32>
    %1 = vector.shape_cast %0 : vector<1x4x256xf32> to vector<4x256xf32>
    %c0_2 = arith.constant 0 : index
    %c0_3 = arith.constant 0 : index
    %2 = vector.load %arg2[%c0_2, %c0_3] : memref<9x256xf32, #tpu.memory_space<vmem>>, vector<9x256xf32>
    %cst = arith.constant dense<0.000000e+00> : vector<4x9xf32>
    %3 = tpu.matmul %1, %2, %cst {dimension_numbers = #tpu.dot_dimension_numbers<[1], [1], [0], [0], [0, 0, 1, 0], [], []>} : vector<4x256xf32>, vector<9x256xf32>, vector<4x9xf32> -> vector<4x9xf32>
    %c0_4 = arith.constant 0 : index
    %c0_5 = arith.constant 0 : index
    %4 = vector.load %arg3[%c0_4, %c0_5] : memref<1x9xf32, #tpu.memory_space<vmem>>, vector<1x9xf32>
    %5 = vector.broadcast %4 : vector<1x9xf32> to vector<4x9xf32>
    %6 = arith.mulf %3, %5 : vector<4x9xf32>
    %cst_6 = arith.constant 1.000000e+00 : f32
    %7 = vector.broadcast %cst_6 : f32 to vector<9x256xf32>
    %8 = arith.subf %2, %7 : vector<9x256xf32>
    %cst_7 = arith.constant 1.000000e+30 : f32
    %9 = vector.broadcast %cst_7 : f32 to vector<9x256xf32>
    %10 = arith.mulf %8, %9 : vector<9x256xf32>
    %11 = vector.shape_cast %1 : vector<4x256xf32> to vector<4x1x256xf32>
    %12 = vector.shape_cast %10 : vector<9x256xf32> to vector<1x9x256xf32>
    %13 = vector.broadcast %11 : vector<4x1x256xf32> to vector<4x9x256xf32>
    %14 = vector.broadcast %12 : vector<1x9x256xf32> to vector<4x9x256xf32>
    %15 = arith.addf %13, %14 : vector<4x9x256xf32>
    %cst_8 = arith.constant dense<0xFF800000> : vector<4x9xf32>
    %16 = vector.multi_reduction <maximumf>, %15, %cst_8 [2] : vector<4x9x256xf32> to vector<4x9xf32>
    %17 = tpu.concatenate %6, %16 in 1 : vector<4x9xf32>, vector<4x9xf32> -> vector<4x18xf32>
    %c0_9 = arith.constant 0 : index
    %c0_10 = arith.constant 0 : index
    %c0_11 = arith.constant 0 : index
    %18 = vector.load %arg4[%c0_9, %c0_10, %c0_11] : memref<3x18x16xf32, #tpu.memory_space<vmem>>, vector<1x18x16xf32>
    %19 = vector.shape_cast %18 : vector<1x18x16xf32> to vector<18x16xf32>
    %cst_12 = arith.constant dense<0.000000e+00> : vector<4x16xf32>
    %20 = tpu.matmul %17, %19, %cst_12 {dimension_numbers = #tpu.dot_dimension_numbers<[1], [0], [0], [1], [0, 0, 1, 1], [], []>} : vector<4x18xf32>, vector<18x16xf32>, vector<4x16xf32> -> vector<4x16xf32>
    %c0_13 = arith.constant 0 : index
    %c0_14 = arith.constant 0 : index
    %c0_15 = arith.constant 0 : index
    %21 = vector.load %arg5[%c0_13, %c0_14, %c0_15] : memref<3x1x16xf32, #tpu.memory_space<vmem>>, vector<1x1x16xf32>
    %22 = vector.shape_cast %21 : vector<1x1x16xf32> to vector<1x16xf32>
    %23 = vector.broadcast %22 : vector<1x16xf32> to vector<4x16xf32>
    %24 = arith.addf %20, %23 : vector<4x16xf32>
    %c1 = arith.constant 1 : index
    %c0_16 = arith.constant 0 : index
    %c0_17 = arith.constant 0 : index
    %25 = vector.load %arg4[%c1, %c0_16, %c0_17] : memref<3x18x16xf32, #tpu.memory_space<vmem>>, vector<1x18x16xf32>
    %26 = vector.shape_cast %25 : vector<1x18x16xf32> to vector<18x16xf32>
    %cst_18 = arith.constant dense<0.000000e+00> : vector<4x16xf32>
    %27 = tpu.matmul %17, %26, %cst_18 {dimension_numbers = #tpu.dot_dimension_numbers<[1], [0], [0], [1], [0, 0, 1, 1], [], []>} : vector<4x18xf32>, vector<18x16xf32>, vector<4x16xf32> -> vector<4x16xf32>
    %c1_19 = arith.constant 1 : index
    %c0_20 = arith.constant 0 : index
    %c0_21 = arith.constant 0 : index
    %28 = vector.load %arg5[%c1_19, %c0_20, %c0_21] : memref<3x1x16xf32, #tpu.memory_space<vmem>>, vector<1x1x16xf32>
    %29 = vector.shape_cast %28 : vector<1x1x16xf32> to vector<1x16xf32>
    %30 = vector.broadcast %29 : vector<1x16xf32> to vector<4x16xf32>
    %31 = arith.addf %27, %30 : vector<4x16xf32>
    %c2 = arith.constant 2 : index
    %c0_22 = arith.constant 0 : index
    %c0_23 = arith.constant 0 : index
    %32 = vector.load %arg4[%c2, %c0_22, %c0_23] : memref<3x18x16xf32, #tpu.memory_space<vmem>>, vector<1x18x16xf32>
    %33 = vector.shape_cast %32 : vector<1x18x16xf32> to vector<18x16xf32>
    %cst_24 = arith.constant dense<0.000000e+00> : vector<4x16xf32>
    %34 = tpu.matmul %17, %33, %cst_24 {dimension_numbers = #tpu.dot_dimension_numbers<[1], [0], [0], [1], [0, 0, 1, 1], [], []>} : vector<4x18xf32>, vector<18x16xf32>, vector<4x16xf32> -> vector<4x16xf32>
    %c2_25 = arith.constant 2 : index
    %c0_26 = arith.constant 0 : index
    %c0_27 = arith.constant 0 : index
    %35 = vector.load %arg5[%c2_25, %c0_26, %c0_27] : memref<3x1x16xf32, #tpu.memory_space<vmem>>, vector<1x1x16xf32>
    %36 = vector.shape_cast %35 : vector<1x1x16xf32> to vector<1x16xf32>
    %37 = vector.broadcast %36 : vector<1x16xf32> to vector<4x16xf32>
    %38 = arith.addf %34, %37 : vector<4x16xf32>
    %39 = vector.extract_strided_slice %24 {offsets = [0, 0], sizes = [4, 8], strides = [1, 1]} : vector<4x16xf32> to vector<4x8xf32>
    %cst_28 = arith.constant 0.353553385 : f32
    %40 = vector.broadcast %cst_28 : f32 to vector<4x8xf32>
    %41 = arith.mulf %39, %40 : vector<4x8xf32>
    %42 = vector.extract_strided_slice %31 {offsets = [0, 0], sizes = [4, 8], strides = [1, 1]} : vector<4x16xf32> to vector<4x8xf32>
    %43 = vector.extract_strided_slice %38 {offsets = [0, 0], sizes = [4, 8], strides = [1, 1]} : vector<4x16xf32> to vector<4x8xf32>
    %cst_29 = arith.constant dense<0.000000e+00> : vector<4x4xf32>
    %44 = tpu.matmul %41, %42, %cst_29 {dimension_numbers = #tpu.dot_dimension_numbers<[1], [1], [0], [0], [0, 0, 1, 0], [], []>} : vector<4x8xf32>, vector<4x8xf32>, vector<4x4xf32> -> vector<4x4xf32>
    %cst_30 = arith.constant dense<0xFF800000> : vector<4xf32>
    %45 = vector.multi_reduction <maximumf>, %44, %cst_30 [1] : vector<4x4xf32> to vector<4xf32>
    %46 = vector.shape_cast %45 : vector<4xf32> to vector<4x1xf32>
    %47 = vector.broadcast %46 : vector<4x1xf32> to vector<4x4xf32>
    %48 = arith.subf %44, %47 : vector<4x4xf32>
    %49 = math.exp %48 : vector<4x4xf32>
    %cst_31 = arith.constant dense<0.000000e+00> : vector<4xf32>
    %50 = vector.multi_reduction <add>, %49, %cst_31 [1] : vector<4x4xf32> to vector<4xf32>
    %51 = vector.shape_cast %50 : vector<4xf32> to vector<4x1xf32>
    %52 = vector.broadcast %51 : vector<4x1xf32> to vector<4x4xf32>
    %53 = arith.divf %49, %52 : vector<4x4xf32>
    %cst_32 = arith.constant dense<0.000000e+00> : vector<4x8xf32>
    %54 = tpu.matmul %53, %43, %cst_32 {dimension_numbers = #tpu.dot_dimension_numbers<[1], [0], [0], [1], [0, 0, 1, 1], [], []>} : vector<4x4xf32>, vector<4x8xf32>, vector<4x8xf32> -> vector<4x8xf32>
    %55 = vector.extract_strided_slice %24 {offsets = [0, 8], sizes = [4, 8], strides = [1, 1]} : vector<4x16xf32> to vector<4x8xf32>
    %cst_33 = arith.constant 0.353553385 : f32
    %56 = vector.broadcast %cst_33 : f32 to vector<4x8xf32>
    %57 = arith.mulf %55, %56 : vector<4x8xf32>
    %58 = vector.extract_strided_slice %31 {offsets = [0, 8], sizes = [4, 8], strides = [1, 1]} : vector<4x16xf32> to vector<4x8xf32>
    %59 = vector.extract_strided_slice %38 {offsets = [0, 8], sizes = [4, 8], strides = [1, 1]} : vector<4x16xf32> to vector<4x8xf32>
    %cst_34 = arith.constant dense<0.000000e+00> : vector<4x4xf32>
    %60 = tpu.matmul %57, %58, %cst_34 {dimension_numbers = #tpu.dot_dimension_numbers<[1], [1], [0], [0], [0, 0, 1, 0], [], []>} : vector<4x8xf32>, vector<4x8xf32>, vector<4x4xf32> -> vector<4x4xf32>
    %cst_35 = arith.constant dense<0xFF800000> : vector<4xf32>
    %61 = vector.multi_reduction <maximumf>, %60, %cst_35 [1] : vector<4x4xf32> to vector<4xf32>
    %62 = vector.shape_cast %61 : vector<4xf32> to vector<4x1xf32>
    %63 = vector.broadcast %62 : vector<4x1xf32> to vector<4x4xf32>
    %64 = arith.subf %60, %63 : vector<4x4xf32>
    %65 = math.exp %64 : vector<4x4xf32>
    %cst_36 = arith.constant dense<0.000000e+00> : vector<4xf32>
    %66 = vector.multi_reduction <add>, %65, %cst_36 [1] : vector<4x4xf32> to vector<4xf32>
    %67 = vector.shape_cast %66 : vector<4xf32> to vector<4x1xf32>
    %68 = vector.broadcast %67 : vector<4x1xf32> to vector<4x4xf32>
    %69 = arith.divf %65, %68 : vector<4x4xf32>
    %cst_37 = arith.constant dense<0.000000e+00> : vector<4x8xf32>
    %70 = tpu.matmul %69, %59, %cst_37 {dimension_numbers = #tpu.dot_dimension_numbers<[1], [0], [0], [1], [0, 0, 1, 1], [], []>} : vector<4x4xf32>, vector<4x8xf32>, vector<4x8xf32> -> vector<4x8xf32>
    %71 = tpu.concatenate %54, %70 in 1 : vector<4x8xf32>, vector<4x8xf32> -> vector<4x16xf32>
    %c0_38 = arith.constant 0 : index
    %c0_39 = arith.constant 0 : index
    %72 = vector.load %arg6[%c0_38, %c0_39] : memref<16x8xf32, #tpu.memory_space<vmem>>, vector<16x8xf32>
    %cst_40 = arith.constant dense<0.000000e+00> : vector<4x8xf32>
    %73 = tpu.matmul %71, %72, %cst_40 {dimension_numbers = #tpu.dot_dimension_numbers<[1], [0], [0], [1], [0, 0, 1, 1], [], []>} : vector<4x16xf32>, vector<16x8xf32>, vector<4x8xf32> -> vector<4x8xf32>
    %c0_41 = arith.constant 0 : index
    %c0_42 = arith.constant 0 : index
    %74 = vector.load %arg7[%c0_41, %c0_42] : memref<1x8xf32, #tpu.memory_space<vmem>>, vector<1x8xf32>
    %75 = vector.broadcast %74 : vector<1x8xf32> to vector<4x8xf32>
    %76 = arith.addf %73, %75 : vector<4x8xf32>
    %c0_43 = arith.constant 0 : index
    %c0_44 = arith.constant 0 : index
    %c0_45 = arith.constant 0 : index
    %77 = vector.load %arg9[%c0_43, %c0_44, %c0_45] : memref<1x4x8xf32, #tpu.memory_space<vmem>>, vector<1x4x8xf32>
    %78 = vector.shape_cast %77 : vector<1x4x8xf32> to vector<4x8xf32>
    %79 = vector.shape_cast %76 : vector<4x8xf32> to vector<1x4x8xf32>
    tpu.vector_store %arg9[%c0_43, %c0_44, %c0_45], %79 {strides = array<i32>} : memref<1x4x8xf32, #tpu.memory_space<vmem>>, vector<1x4x8xf32>,
    %cst_46 = arith.constant dense<0.000000e+00> : vector<8x256xf32>
    %80 = tpu.matmul %76, %1, %cst_46 {dimension_numbers = #tpu.dot_dimension_numbers<[0], [0], [1], [1], [0, 1, 1, 1], [], []>} : vector<4x8xf32>, vector<4x256xf32>, vector<8x256xf32> -> vector<8x256xf32>
    %c0_47 = arith.constant 0 : index
    %c0_48 = arith.constant 0 : index
    %c0_49 = arith.constant 0 : index
    %81 = vector.load %arg8[%c0_47, %c0_48, %c0_49] : memref<1x8x256xf32, #tpu.memory_space<vmem>>, vector<1x8x256xf32>
    %82 = vector.shape_cast %81 : vector<1x8x256xf32> to vector<8x256xf32>
    %83 = vector.shape_cast %80 : vector<8x256xf32> to vector<1x8x256xf32>
    tpu.vector_store %arg8[%c0_47, %c0_48, %c0_49], %83 {strides = array<i32>} : memref<1x8x256xf32, #tpu.memory_space<vmem>>, vector<1x8x256xf32>,
    return
  }
  func.func @transform_0(%arg0: i32) -> (i32, i32, i32) {
    %c0_i32 = arith.constant 0 : i32
    %c0_i32_0 = arith.constant 0 : i32
    %c0_i32_1 = arith.constant 0 : i32
    return %arg0, %c0_i32, %c0_i32_0 : i32, i32, i32
  }
  func.func @transform_1(%arg0: i32) -> (i32, i32) {
    %c0_i32 = arith.constant 0 : i32
    %c0_i32_0 = arith.constant 0 : i32
    %c0_i32_1 = arith.constant 0 : i32
    return %c0_i32, %c0_i32_0 : i32, i32
  }
  func.func @transform_2(%arg0: i32) -> (i32, i32) {
    %c0_i32 = arith.constant 0 : i32
    %c0_i32_0 = arith.constant 0 : i32
    %c0_i32_1 = arith.constant 0 : i32
    return %c0_i32, %c0_i32_0 : i32, i32
  }
  func.func @transform_3(%arg0: i32) -> (i32, i32, i32) {
    %c0_i32 = arith.constant 0 : i32
    %c0_i32_0 = arith.constant 0 : i32
    %c0_i32_1 = arith.constant 0 : i32
    %c0_i32_2 = arith.constant 0 : i32
    return %c0_i32, %c0_i32_0, %c0_i32_1 : i32, i32, i32
  }
  func.func @transform_4(%arg0: i32) -> (i32, i32, i32) {
    %c0_i32 = arith.constant 0 : i32
    %c0_i32_0 = arith.constant 0 : i32
    %c0_i32_1 = arith.constant 0 : i32
    %c0_i32_2 = arith.constant 0 : i32
    return %c0_i32, %c0_i32_0, %c0_i32_1 : i32, i32, i32
  }
  func.func @transform_5(%arg0: i32) -> (i32, i32) {
    %c0_i32 = arith.constant 0 : i32
    %c0_i32_0 = arith.constant 0 : i32
    %c0_i32_1 = arith.constant 0 : i32
    return %c0_i32, %c0_i32_0 : i32, i32
  }
  func.func @transform_6(%arg0: i32) -> (i32, i32) {
    %c0_i32 = arith.constant 0 : i32
    %c0_i32_0 = arith.constant 0 : i32
    %c0_i32_1 = arith.constant 0 : i32
    return %c0_i32, %c0_i32_0 : i32, i32
  }
  func.func @transform_7(%arg0: i32) -> (i32, i32, i32) {
    %c0_i32 = arith.constant 0 : i32
    %c0_i32_0 = arith.constant 0 : i32
    %c0_i32_1 = arith.constant 0 : i32
    return %arg0, %c0_i32, %c0_i32_0 : i32, i32, i32
  }
  func.func @transform_8(%arg0: i32) -> (i32, i32, i32) {
    %c0_i32 = arith.constant 0 : i32
    %c0_i32_0 = arith.constant 0 : i32
    %c0_i32_1 = arith.constant 0 : i32
    return %arg0, %c0_i32, %c0_i32_0 : i32, i32, i32
  }
}

</mosaic_0001>

<bundles_post_ra>
// kernel: tpu_custom_call.1
= control target key start
LH: loop header
LB: loop body
LE: loop exit
PB: predicated region body
PF: predicated region fallthrough
CT: control target
= control target key end

     0   :  { %s1442_s0 = inlined_call_operand.vmem [shape: f32[2,4,256], index: 0, kind: input, shape index: {}]   ;;  %s1443_s1 = inlined_call_operand.vmem [shape: f32[9,256], index: 1, kind: input, shape index: {}]   ;;  %s1444_s2 = inlined_call_operand.vmem [shape: f32[1,9], index: 2, kind: input, shape index: {}]   ;;  %s1445_s3 = inlined_call_operand.vmem [shape: f32[3,18,16], index: 3, kind: input, shape index: {}]   ;;  %s1446_s4 = inlined_call_operand.vmem [shape: f32[3,1,16], index: 4, kind: input, shape index: {}]   ;;  %s1447_s5 = inlined_call_operand.vmem [shape: f32[16,8], index: 5, kind: input, shape index: {}]   ;;  %s1448_s6 = inlined_call_operand.vmem [shape: f32[1,8], index: 6, kind: input, shape index: {}]   ;;  %s1449_s7 = inlined_call_operand.hbm [shape: f32[2,8,256], index: 7, kind: output, shape index: {0}]   ;;  %s1450_s8 = inlined_call_operand.hbm [shape: f32[2,4,8], index: 8, kind: output, shape index: {1}]  }
   0x1   :  { %1451 = sst [smem:[#allocation8_spill]] %s1442_s0 }
   0x2   :  { %1452 = sst [smem:[#allocation9_spill]] %s1443_s1 }
   0x3   :  { %1453 = sst [smem:[#allocation10_spill]] %s1444_s2 }
   0x4   :  { %14 = vsyncpa [#allocation3], 0 }
   0x5   :  { %16 = vsyncpa [#allocation3 + $0x1], 0 }
   0x6   :  { %17 = vsyncpa [#allocation5], 0 }
   0x7   :  { %19 = vsyncpa [#allocation5 + $0x1], 0  ;;  %s1245_s27 = smov 0   ;;  %s1247_s28 = smov 0  }
   0x8   :  { %s1249_s29 = smov 0   ;;  %s1251_s30 = smov 0  }
   0x9 LB: > { %s1266_s9 = sadd.s32 4294967295, %s1196_s30   ;;  %s994_s10 = sadd.s32 4294967294, %s1196_s30   ;;  %s1196_s30 = sphi %s1251_s30, %s1462_s30   ;;  %s1192_s29 = sphi %s1249_s29, %s1461_s29   ;;  %s1188_s28 = sphi %s1247_s28, %s1460_s28   ;;  %s1184_s27 = sphi %s1245_s27, %s1459_s27  }
   0xa   : > { %s1270_s11 = sadd.s32 1, %s1196_s30   ;;  %s184_s12 = sadd.s32 1, %s1192_s29 }
   0xb   : > { %s181_s13 = ssub.s32 %s1196_s30, %s1270_s11  ;;  %p194_p0 = scmp.ne.s32.totalorder %s1192_s29, %s1188_s28 }
   0xc   : > { %p182_p1 = scmp.eq.s32.totalorder %s181_s13, 0  ;;  %p195_p2 = scmp.eq.s32.totalorder %s1266_s9, 1 }
   0xd   : > { %p200_p3 = scmp.ne.s32.totalorder %s1188_s28, %s1184_s27  ;;  %p201_p4 = scmp.eq.s32.totalorder %s994_s10, 1 }
   0xe   : > { %s1281_s14 = scalar_select %p182_p1, %s1192_s29, %s184_s12  }
   0xf   : > { %p1283_p5 = por %p195_p2, %p194_p0  ;;  %p1287_p6 = por %p201_p4, %p200_p3 }
  0x10   : > { %p997_p7 = scmp.ge.s32.totalorder %s1196_s30, 1  ;;  %p271_p8 = scmp.lt.s32.totalorder %s1196_s30, 3 }
  0x12   : > { %p272_p9 = pnand %p997_p7, %p271_p8 }
  0x13   : > { %p310_p10 = scmp.lt.s32.totalorder (!%p272_p9), %s1266_s9, 1  ;;  %s1456_s1 = sld [smem:[#allocation9_spill]] (!%p272_p9) }
  0x14   : > { %275 = sbr.rel (%p272_p9) target bundleno = 1486 (0x5ce), region = 48  ;;  %s1457_s0 = sld [smem:[#allocation8_spill]] (!%p272_p9) }
  0x15   : > { %s1458_s2 = sld [smem:[#allocation10_spill]] (!%p272_p9)  ;;  %s1198_s12 = smov (!%p272_p9), 120  }
  0x16   : > { %s1199_s22 = smov (!%p272_p9), 8   ;;  %s1386_s23 = sand.u32 (!%p272_p9), 1, %s1188_s28  }
  0x17   : > { %s872_s21 = scalar_lea.sflag (!%p272_p9), [#allocation5], %s1386_s23 }
  0x19   : > { %v316_v0 = vld [vmem:[%s1456_s1] sm:$0xff]  ;;  %v317_v1 = vld [vmem:[%s1456_s1 + $0x8] sm:$0xff]  ;;  %v318_v2 = vld [vmem:[%s1456_s1 + $0x10] sm:$0x1]  ;;  %s311_s25 = scalar_select %p310_p10, %s1266_s9, 1  ;;  %vm380_vm0 = vcmask 1040384  }
  0x1a   : > { %340 = vmatpush.xpose.msra.mxu0 %v318_v2  ;;  %v319_v3 = vld [vmem:[%s1456_s1 + $0x18] sm:$0x1]  ;;  %v1002_v4 = vadd.f32 -1.0, %v316_v0  ;;  %v1003_v5 = vadd.f32 -1.0, %v317_v1  ;;  %v1004_v6 = vadd.f32 -1.0, %v318_v2  ;;  %vm385_vm1 = vcmask 1042434  }
  0x1b   : > { %360 = vmatpush.xpose.msra.mxu1 %v319_v3  ;;  %s1040_s26 = sshll.u32 %s311_s25, 3  ;;  %v1005_v7 = vadd.f32 -1.0, %v319_v3  ;;  %vm382_vm2 = vcmask 1041409   ;;  %vm388_vm3 = vcmask 1043459   ;;  %v488_v63 = vld [vmem:[%s1445_s3 + $0x10] sm:$0x3] }
  0x1c   : > { %s314_s13 = scalar_lea.vmem %s1457_s0, %s1040_s26  ;;  %v375_v9 = vmul.f32 1e+30, %v1002_v4  ;;  %v376_v11 = vmul.f32 1e+30, %v1003_v5  ;;  %v377_v12 = vmul.f32 1e+30, %v1004_v6 }
  0x1d   : > { %v315_v8 = vld [vmem:[%s314_s13] sm:$0xff]  ;;  %v378_v13 = vmul.f32 1e+30, %v1005_v7  ;;  %vm497_vm4 = vcmask 1041408   ;;  %v1008_v4 = vld [vmem:[%s1445_s3 + $0x18] sm:$0xff]  ;;  %v1014_v7 = vld [vmem:[%s1445_s3 + $0x30] sm:$0xff] }
  0x1e   : > { %341 = vmatpush.xpose.msra.mxu0 %v316_v0  ;;  %v379_v10 = vrot.slane %v315_v8, 3  ;;  %321 = vst [vmem:[#allocation1] ss:$2 sm:$0xff] %v315_v8  ;;  %v1010_v0 = vld [vmem:[%s1445_s3 + $0x28] sm:$0x3]  ;;  %1006 = vmatpush.msk.msra.mxu2 %vm497_vm4, %v488_v63  ;;  %v1009_v2 = vld [vmem:[%s1445_s3 + $0x20] sm:$0xff] }
  0x1f   : > { %361 = vmatpush.xpose.msra.mxu1 %v317_v1  ;;  %1012 = vmatpush.msk.msra.mxu3 %vm497_vm4, %v1010_v0  ;;  %v487_v1 = vld [vmem:[%s1445_s3 + $0x8] sm:$0xff]  ;;  %v486_v3 = vld [vmem:[%s1445_s3] sm:$0xff]  ;;  %v1015_v6 = vld [vmem:[%s1445_s3 + $0x38] sm:$0xff]  ;;  %vm469_vm5 = vcmask 203912   ;;  %vm484_vm6 = vcmask 72704   ;;  %vm493_vm7 = vcmask 146432  }
  0x20   : > { %v381_v14 = vsel %vm380_vm0, %v315_v8, %v379_v10  ;;  %v386_v15 = vsel %vm385_vm1, %v315_v8, %v379_v10  ;;  %v383_v16 = vsel %vm382_vm2, %v315_v8, %v379_v10  ;;  %v389_v17 = vsel %vm388_vm3, %v315_v8, %v379_v10  ;;  %515 = vmatpush.msra.mxu2 %v487_v1  ;;  %v1016_v5 = vld [vmem:[%s1445_s3 + $0x40] sm:$0x3]  ;;  %s999_s26 = sshll.u32 %s1386_s23, 2  ;;  %s1122_s0 = scalar_lea.hbm %s1450_s8, 8 }
  0x21   : > { %v391_v18 = vperm.slane %v381_v14, 0  ;;  %v392_v19 = vperm.slane %v381_v14, 1  ;;  %v387_v20 = vrot.slane %v386_v15, 2  ;;  %v384_v21 = vrot.slane %v383_v16, 1  ;;  %547 = vmatpush.msra.mxu3 %v1009_v2  ;;  %s309_s10 = scalar_lea.vmem [#allocation4], %s999_s26 }
  0x22   : > { %v390_v22 = vrot.slane %v389_v17, 3  ;;  %516 = vmatpush.msra.mxu2 %v486_v3  ;;  %vm586_vm8 = vcmask 64512   ;;  %vm642_vm9 = vcmask 1043456   ;;  %vm613_vm10 = vcmask 27648   ;;  %s899_s19 = sshll.u32 %s309_s10, 4  ;;  %s900_s19 = int_to_ptr.vmem [resolvable:$true] %s899_s19 }
  0x23   : > { %v407_v23 = vadd.f32 %v391_v18, %v375_v9  ;;  %v408_v24 = vadd.f32 %v392_v19, %v376_v11  ;;  %v395_v25 = vperm.slane %v387_v20, 0  ;;  %v396_v26 = vperm.slane %v387_v20, 1  ;;  %548 = vmatpush.msra.mxu3 %v1008_v4 }
  0x24   : > { %v393_v27 = vperm.slane %v384_v21, 0  ;;  %v394_v28 = vperm.slane %v384_v21, 1  ;;  %v409_v29 = vadd.f32 %v391_v18, %v377_v12  ;;  %v410_v30 = vadd.f32 %v392_v19, %v378_v13  ;;  %1018 = vmatpush.msk.msrb.mxu2 %vm497_vm4, %v1016_v5 }
  0x25   : > { %v423_v31 = vmax.f32 %v407_v23, %v408_v24  ;;  %v415_v32 = vadd.f32 %v395_v25, %v375_v9  ;;  %v416_v33 = vadd.f32 %v396_v26, %v376_v11  ;;  %v322_v34 = vld.sshfl [vmem:[#allocation1] sm:$0xff pattern:$0x75316420]  ;;  %v323_v35 = vld.sshfl [vmem:[#allocation1 + $0x8] sm:$0xff pattern:$0x75316420]  ;;  %v417_v38 = vadd.f32 %v395_v25, %v377_v12 }
  0x26   : > { %v411_v36 = vadd.f32 %v393_v27, %v375_v9  ;;  %v412_v37 = vadd.f32 %v394_v28, %v376_v11  ;;  %342 = vmatmul.f32.vlgmr.msra.gmra.mxu0 %v322_v34  ;;  %362 = vmatmul.f32.vlgmr.msra.gmra.mxu1 %v323_v35  ;;  %814 = vst [vmem:[#allocation1] ss:$2 sm:$0xff] %v315_v8  ;;  %v426_v40 = vsel %vm380_vm0, %v409_v29, -inf  ;;  %v427_v41 = vsel %vm380_vm0, %v410_v30, -inf  ;;  %v1089_v29 = vld [vmem:[%s1458_s2] ss:$0 sm:$0xff] }
  0x27   : > { %424 = vmax.xlane.f32.xlu0 %v423_v31  ;;  %v439_v39 = vmax.f32 %v415_v32, %v416_v33  ;;  %v418_v42 = vadd.f32 %v396_v26, %v378_v13  ;;  %v413_v44 = vadd.f32 %v393_v27, %v377_v12  ;;  %v414_v45 = vadd.f32 %v394_v28, %v378_v13 }
  0x28   : > { %v431_v43 = vmax.f32 %v411_v36, %v412_v37  ;;  %v428_v46 = vmax.f32 %v426_v40, %v427_v41  ;;  %v442_v47 = vsel %vm380_vm0, %v417_v38, -inf  ;;  %v397_v51 = vperm.slane %v390_v22, 0  ;;  %579 = vmatpush.msrb.mxu2 %v1015_v6  ;;  %v1090_v41 = vld [vmem:[%s1446_s4] ss:$0 sm:$0xff] }
  0x29   : > { %440 = vmax.xlane.f32.xlu2 %v439_v39  ;;  %v443_v48 = vsel %vm380_vm0, %v418_v42, -inf  ;;  %v434_v49 = vsel %vm380_vm0, %v413_v44, -inf  ;;  %v435_v50 = vsel %vm380_vm0, %v414_v45, -inf  ;;  %v398_v52 = vperm.slane %v390_v22, 1  ;;  %v1091_v42 = vld [vmem:[%s1446_s4 + $0x1] ss:$0 sm:$0xff] }
  0x2a   : > { %432 = vmax.xlane.f32.xlu1 %v431_v43  ;;  %v444_v53 = vmax.f32 %v442_v47, %v443_v48  ;;  %v436_v54 = vmax.f32 %v434_v49, %v435_v50  ;;  %v421_v55 = vadd.f32 %v397_v51, %v377_v12  ;;  %v419_v57 = vadd.f32 %v397_v51, %v375_v9  ;;  %v1092_v48 = vld [vmem:[%s1446_s4 + $0x2] ss:$0 sm:$0xff] }
  0x2b   : > { %v422_v56 = vadd.f32 %v398_v52, %v378_v13  ;;  %v420_v58 = vadd.f32 %v398_v52, %v376_v11  ;;  %580 = vmatpush.msrb.mxu2 %v1014_v7  ;;  %v463_v9 = vlaneseq  ;;  %vm638_vm15 = vcmask 31744  }
  0x2c   : > { %v450_v59 = vsel %vm380_vm0, %v421_v55, -inf  ;;  %vm756_vm4 = vcmask 130048  }
  0x2d   : > { %v451_v60 = vsel %vm380_vm0, %v422_v56, -inf  ;;  %v447_v61 = vmax.f32 %v419_v57, %v420_v58  ;;  %v464_v12 = vand.u32 127, %v463_v9 }
  0x2e   : > { %v452_v62 = vmax.f32 %v450_v59, %v451_v60 }
  0x2f   : > { %429 = vmax.xlane.f32.xlu0 %v428_v46  ;;  %v465_v14 = vadd.s32 4294967287, %v464_v12  ;;  %v467_v15 = vadd.s32 4294967279, %v464_v12 }
  0x31   : > { %445 = vmax.xlane.f32.xlu2 %v444_v53 }
  0x32   : > { %437 = vmax.xlane.f32.xlu1 %v436_v54 }
  0x37   : > { %448 = vmax.xlane.f32.xlu0 %v447_v61 }
  0x3a   : > { %453 = vmax.xlane.f32.xlu1 %v452_v62 }
  0x9a   : > { %v425_v8 = vpop.xlane.xlu0 %424 }
  0x9b   : > { %v466_v25 = vperm.slane %v425_v8, %v465_v14 }
  0x9c   : > { %v441_v10 = vpop.xlane.xlu2 %440 }
  0x9d   : > { %v433_v11 = vpop.xlane.xlu1 %432  ;;  %v474_v23 = vperm.slane %v441_v10, %v465_v14 }
  0x9e   : > { %v471_v21 = vperm.slane %v433_v11, %v465_v14 }
  0xa2   : > { %v430_v13 = vpop.xlane.xlu0 %429 }
  0xa3   : > { %v343_v19 = vpop.f32.mrf.mxu0  ;;  %v363_v20 = vpop.f32.mrf.mxu1  ;;  %v468_v22 = vperm.slane %v430_v13, %v467_v15 }
  0xa4   : > { %v446_v17 = vpop.xlane.xlu2 %445  ;;  %v364_v28 = vadd.f32 %v363_v20, %v343_v19 }
  0xa5   : > { %v438_v16 = vpop.xlane.xlu1 %437  ;;  %v475_v24 = vperm.slane %v446_v17, %v467_v15  ;;  %v470_v30 = vsel %vm469_vm5, %v468_v22, %v466_v25 }
  0xa6   : > { %v472_v18 = vperm.slane %v438_v16, %v467_v15  ;;  %v370_v36 = vmul.f32 %v1089_v29, %v364_v28  ;;  %v751_v28 = vld [vmem:[%s1447_s5 + $0x8] sm:$0xff]  ;;  %v750_v29 = vld [vmem:[%s1447_s5] sm:$0xff] }
  0xa7   : > { %v476_v32 = vsel %vm469_vm5, %v475_v24, %v474_v23 }
  0xa8   : > { %v473_v26 = vsel %vm469_vm5, %v472_v18, %v471_v21 }
  0xa9   : > { %v480_v33 = vsel %vm382_vm2, %v473_v26, %v470_v30 }
  0xaa   : > { %v449_v27 = vpop.xlane.xlu0 %448  ;;  %v481_v38 = vsel %vm385_vm1, %v476_v32, %v480_v33 }
  0xab   : > { %v477_v31 = vperm.slane %v449_v27, %v465_v14 }
  0xad   : > { %v454_v34 = vpop.xlane.xlu1 %453 }
  0xae   : > { %v478_v35 = vperm.slane %v454_v34, %v467_v15  ;;  %v815_v34 = vld.sshfl [vmem:[#allocation1] sm:$0xff pattern:$0x75316420] }
  0xb0   : > { %v479_v37 = vsel %vm469_vm5, %v478_v35, %v477_v31  ;;  %v816_v35 = vld.sshfl [vmem:[#allocation1 + $0x8] sm:$0xff pattern:$0x75316420]  ;;  %vm780_vm5 = vcmask 60416  }
  0xb1   : > { %v482_v39 = vsel %vm388_vm3, %v479_v37, %v481_v38 }
  0xb2   : > { %v485_v40 = vsel %vm484_vm6, %v370_v36, %v482_v39  ;;  %v1093_v36 = vld [vmem:[%s1448_s6] ss:$0 sm:$0xff] }
  0xb3   : > { %1007 = vmatmul.msk.f32.vlgmr.msra.gmra.mxu2 %vm493_vm7, %v485_v40  ;;  %1013 = vmatmul.msk.f32.vlgmr.msra.gmra.mxu3 %vm493_vm7, %v485_v40 }
  0xbb   : > { %1019 = vmatmul.msk.f32.vlgmr.msrb.gmra.mxu2 %vm493_vm7, %v485_v40 }
 0x136   : > { %v518_v43 = vpop.f32.mrf.mxu2  ;;  %v550_v44 = vpop.f32.mrf.mxu3 }
 0x137   : > { %v519_v45 = vadd.f32 %v1090_v41, %v518_v43  ;;  %v551_v46 = vadd.f32 %v1091_v42, %v550_v44 }
 0x139   : > { %v585_v47 = vmul.f32 0.35355338, %v519_v45  ;;  %668 = vrot.lane.b32.xlu2 %v551_v46, %s1198_s12  ;;  %1020 = vmatpush.xpose.msk.msrb.mxu3 %vm586_vm8, %v551_v46 }
 0x13b   : > { %666 = vrot.lane.b32.xlu0 %v585_v47, %s1198_s12 }
 0x13c   : > { %1021 = vmatmul.msk.f32.vlgmr.msrb.gmra.mxu3 %vm586_vm8, %v585_v47 }
 0x13d   : > { %774 = vmatpush.msra.mxu3 %v751_v28 }
 0x13e   : > { %v582_v49 = vpop.f32.mrf.mxu2 }
 0x13f   : > { %v583_v50 = vadd.f32 %v1092_v48, %v582_v49  ;;  %775 = vmatpush.msra.mxu3 %v750_v29 }
 0x141   : > { %718 = vrot.lane.b32.xlu2 %v583_v50, %s1198_s12  ;;  %1022 = vmatpush.msk.msrb.mxu0 %vm642_vm9, %v583_v50  ;;  %s1037_s12 = sshll.u32 %s1266_s9, 2 }
 0x142   : > { %s897_s18 = scalar_lea.hbm %s1450_s8, %s1037_s12 }
 0x143   : > { %1029 = vmatpush.msk.msra.mxu0 %vm642_vm9, %v815_v34  ;;  %s901_s20 = sshll.u32 %s897_s18, 4  ;;  %s902_s20 = int_to_ptr.hbm [resolvable:$true] %s901_s20 }
 0x193   : > { %v669_v51 = vpop.permute.xlu2 %668 }
 0x194   : > { %1024 = vmatpush.xpose.msk.msrb.mxu1 %vm586_vm8, %v669_v51 }
 0x198   : > { %1031 = vmatpush.msk.msra.mxu1 %vm642_vm9, %v816_v35 }
 0x19b   : > { %v719_v52 = vpop.permute.xlu2 %718 }
 0x19c   : > { %1026 = vmatpush.msk.msra.mxu2 %vm642_vm9, %v719_v52 }
 0x1ad   : > { %v667_v53 = vpop.permute.xlu0 %666 }
 0x1ae   : > { %1025 = vmatmul.msk.f32.vlgmr.msrb.gmra.mxu1 %vm586_vm8, %v667_v53 }
 0x1bf   : > { %v610_v56 = vpop.f32.mrf.mxu3 }
 0x1c0   : > { %v614_v57 = vsel %vm613_vm10, %v610_v56, -inf }
 0x22b   : > { %v691_v54 = vpop.f32.mrf.mxu1 }
 0x22c   : > { %v694_v55 = vsel %vm613_vm10, %v691_v54, -inf }
 0x22d   : > { %695 = vmax.xlane.f32.xlu1 %v694_v55 }
 0x235   : > { %615 = vmax.xlane.f32.xlu1 %v614_v57 }
 0x2a0   : > { %v696_v58 = vpop.xlane.xlu1 %695 }
 0x2a1   : > { %v697_v59 = vsub.f32 %v691_v54, %v696_v58 }
 0x2a3   : > { %v698_v60 = vmul.f32 1.442695, %v697_v59 }
 0x2a5   : > { %1094 = vpow2.f32 %v698_v60 }
 0x2a8   : > { %v616_v61 = vpop.xlane.xlu1 %615 }
 0x2a9   : > { %v617_v62 = vsub.f32 %v610_v56, %v616_v61 }
 0x2ab   : > { %v1095_v63 = vpop.eup %1094  ;;  %v618_v0 = vmul.f32 1.442695, %v617_v62 }
 0x2ac   : > { %v700_v1 = vsel %vm613_vm10, %v1095_v63, 0.0 }
 0x2ad   : > { %1096 = vpow2.f32 %v618_v0  ;;  %701 = vadd.xlane.f32.xlu1 %v700_v1 }
 0x2b3   : > { %v1097_v2 = vpop.eup %1096 }
 0x2b4   : > { %v620_v3 = vsel %vm613_vm10, %v1097_v2, 0.0 }
 0x2b5   : > { %621 = vadd.xlane.f32.xlu0 %v620_v3 }
 0x320   : > { %v702_v4 = vpop.xlane.xlu1 %701 }
 0x321   : > { %1098 = vrcp.f32 %v702_v4  ;;  %v714_v9 = vand.u32 2147483648, %v702_v4  ;;  %v712_v11 = vand.u32 2147483647, %v702_v4  ;;  %vm708_vm12 = vweird.f32 %v702_v4 }
 0x323   : > { %v715_v14 = vor.u32 1.1754944e-38, %v714_v9  ;;  %vm713_vm14 = vcmp.eq.f32.partialorder %v712_v11, 8.507059e+37 }
 0x327   : > { %v1099_v5 = vpop.eup %1098 }
 0x328   : > { %v704_v6 = vmul.f32 %v1099_v5, %v702_v4  ;;  %v622_v7 = vpop.xlane.xlu0 %621  ;;  %vm709_vm11 = vweird.f32 %v1099_v5 }
 0x329   : > { %1100 = vrcp.f32 %v622_v7  ;;  %vm710_vm13 = vmor %vm708_vm12, %vm709_vm11  ;;  %v634_v20 = vand.u32 2147483648, %v622_v7  ;;  %v632_v22 = vand.u32 2147483647, %v622_v7  ;;  %vm628_vm1 = vweird.f32 %v622_v7 }
 0x32a   : > { %v705_v8 = vsub.f32 1.0, %v704_v6 }
 0x32b   : > { %v635_v24 = vor.u32 1.1754944e-38, %v634_v20  ;;  %vm633_vm3 = vcmp.eq.f32.partialorder %v632_v22, 8.507059e+37 }
 0x32c   : > { %v706_v10 = vmul.f32 %v1099_v5, %v705_v8 }
 0x32e   : > { %v707_v12 = vadd.f32 %v1099_v5, %v706_v10 }
 0x32f   : > { %v1101_v13 = vpop.eup %1100 }
 0x330   : > { %v711_v15 = vsel %vm710_vm13, %v1099_v5, %v707_v12  ;;  %v624_v16 = vmul.f32 %v1101_v13, %v622_v7  ;;  %vm629_vm0 = vweird.f32 %v1101_v13 }
 0x331   : > { %v716_v17 = vsel %vm713_vm14, %v715_v14, %v711_v15  ;;  %vm630_vm2 = vmor %vm628_vm1, %vm629_vm0 }
 0x332   : > { %v625_v18 = vsub.f32 1.0, %v624_v16  ;;  %v717_v19 = vmul.f32 %v1095_v63, %v716_v17 }
 0x334   : > { %v626_v21 = vmul.f32 %v1101_v13, %v625_v18  ;;  %1027 = vmatmul.msk.f32.vlgmr.msra.gmra.mxu2 %vm638_vm15, %v717_v19 }
 0x336   : > { %v627_v23 = vadd.f32 %v1101_v13, %v626_v21 }
 0x338   : > { %v631_v25 = vsel %vm630_vm2, %v1101_v13, %v627_v23 }
 0x339   : > { %v636_v26 = vsel %vm633_vm3, %v635_v24, %v631_v25 }
 0x33a   : > { %v637_v27 = vmul.f32 %v1097_v2, %v636_v26 }
 0x33c   : > { %1023 = vmatmul.msk.f32.vlgmr.msrb.gmra.mxu0 %vm638_vm15, %v637_v27 }
 0x3b7   : > { %v742_v30 = vpop.f32.mrf.mxu2 }
 0x3b8   : > { %746 = vrot.lane.b32.xlu1 %v742_v30, %s1199_s22  ;;  %s1116_s22 = sshra.s32 %s902_s20, 4  ;;  %s1117_s22 = int_to_ptr.hbm [resolvable:$true] %s1116_s22 }
 0x3b9   : > { %v663_v31 = vpop.f32.mrf.mxu0  ;;  %s1118_s24 = scalar_lea.hbm %s1117_s22, 4  ;;  %p1123_p0 = scmp.lt.s32.totalorder %s1117_s22, %s1450_s8 }
 0x3ba   : > { %p1119_p11 = scmp.ne.s32.totalorder %s1117_s22, %s1118_s24  ;;  %p1124_p1 = scmp.lt.s32.totalorder %s1122_s0, %s1118_s24 }
 0x3bc   : > { %p1120_p12 = pnand %p1119_p11, %p1283_p5  ;;  %p1125_p2 = por %p1124_p1, %p1123_p0 }
 0x3be   : > { %p1121_p13 = pneg %p1120_p12 }
 0x3c0   : > { %p1126_p3 = pnand %p1125_p2, %p1121_p13 }
 0x42a   : > { %v747_v32 = vpop.permute.xlu1 %746 }
 0x42b   : > { %v749_v33 = vsel %vm586_vm8, %v663_v31, %v747_v32 }
 0x42c   : > { %1028 = vmatmul.msk.f32.vlgmr.msra.gmra.mxu3 %vm756_vm4, %v749_v33 }
 0x4af   : > { %v777_v37 = vpop.f32.mrf.mxu3 }
 0x4b0   : > { %v778_v38 = vadd.f32 %v1093_v36, %v777_v37 }
 0x4b2   : > { %782 = vxpose.xlu2.b32.start.end [1/1] (short) (narrow) %v778_v38, 8  ;;  %781 = vst.msk [vmem:[%s309_s10] sm:$0xf] %vm780_vm5, %v778_v38 }
 0x54b   : > { %v798_v39 = vpop.trf.xlu2 }
 0x54c   : > { %1030 = vmatmul.msk.f32.vlgmr.msra.gmra.mxu0 %vm638_vm15, %v798_v39  ;;  %1032 = vmatmul.msk.f32.vlgmr.msra.gmra.mxu1 %vm638_vm15, %v798_v39 }
 0x54d   : > { %1129 = shalt.err (!%p1126_p3)
}
 0x54e   : > { %1043 = dma.vmem_to_hbm [thread:$0]  (%p1283_p5), %s900_s19, 64, %s902_s20, %s872_s21  }
 0x54f   : > { %s998_s10 = sshll.u32 %s1386_s23, 4  ;;  %s1041_s12 = sshll.u32 %s1266_s9, 4 }
 0x550   : > { %s883_s18 = scalar_lea.hbm %s1449_s7, %s1041_s12  ;;  %s302_s25 = scalar_lea.vmem [#allocation2], %s998_s10 }
 0x551   : > { %s885_s1 = sshll.u32 %s302_s25, 4  ;;  %s887_s2 = sshll.u32 %s883_s18, 4  ;;  %s886_s1 = int_to_ptr.vmem [resolvable:$true] %s885_s1  ;;  %s888_s2 = int_to_ptr.hbm [resolvable:$true] %s887_s2 }
 0x552   : > { %s867_s0 = scalar_lea.sflag [#allocation3], %s1386_s23  ;;  %s1144_s22 = sshra.s32 %s888_s2, 4  ;;  %s1145_s22 = int_to_ptr.hbm [resolvable:$true] %s1144_s22 }
 0x553   : > { %s1146_s19 = scalar_lea.hbm %s1145_s22, 16  ;;  %s1150_s21 = scalar_lea.hbm %s1449_s7, 32 }
 0x554   : > { %p1147_p4 = scmp.ne.s32.totalorder %s1145_s22, %s1146_s19  ;;  %p1151_p9 = scmp.lt.s32.totalorder %s1145_s22, %s1449_s7 }
 0x555   : > { %p1152_p10 = scmp.lt.s32.totalorder %s1150_s21, %s1146_s19 }
 0x556   : > { %p1148_p7 = pnand %p1147_p4, %p1283_p5 }
 0x557   : > { %p1153_p11 = por %p1152_p10, %p1151_p9 }
 0x558   : > { %p1149_p8 = pneg %p1148_p7 }
 0x55a   : > { %p1154_p12 = pnand %p1153_p11, %p1149_p8 }
 0x5c9   : > { %v841_v40 = vpop.f32.mrf.mxu0  ;;  %v861_v41 = vpop.f32.mrf.mxu1 }
 0x5ca   : > { %864 = vst [vmem:[%s302_s25] sm:$0xff] %v841_v40 }
 0x5cb   : > { %865 = vst [vmem:[%s302_s25 + $0x8] sm:$0xff] %v861_v41 }
 0x5cc   : > { %1157 = shalt.err (!%p1154_p12)
}
 0x5cd   : > { %1042 = dma.vmem_to_hbm [thread:$0]  (%p1283_p5), %s886_s1, 256, %s888_s2, %s867_s0  }
 0x5ce PF: > { %p1053_p13 = scmp.ge.s32.totalorder %s1196_s30, 2  ;;  %s913_s23 = sand.u32 1, %s1184_s27  }
 0x5cf   : > { %s914_s10 = scalar_lea.sflag [#allocation3], %s913_s23 }
 0x5d0   : > { %p1047_p0 = pnand %p1053_p13, %p1287_p6 }
 0x5d2   : > { %p1048_p1 = pneg %p1047_p0 }
 0x5d4   : > { %1175 = dma.done.wait (%p1048_p1), %s914_s10, 256  }
 0x5d5   : > { %1177 = vsyncadd (%p1048_p1), %s914_s10, 4294967040  ;;  %s924_s12 = scalar_lea.sflag [#allocation5], %s913_s23 }
 0x5d6   : > { %1179 = dma.done.wait (%p1048_p1), %s924_s12, 64  }
 0x5d7   : > { %1181 = vsyncadd (%p1048_p1), %s924_s12, 4294967232  ;;  %p22_p5 = scmp.ge.s32.totalorder %s1270_s11, 4   ;;  %s1459_s27 = smov %s1188_s28 }
 0x5d8   : > { %s1460_s28 = smov %s1192_s29  ;;  %s1461_s29 = smov %s1281_s14 }
 0x5d9   : > { %s1462_s30 = smov %s1270_s11  ;;  %24 = sbr.rel (!%p22_p5) target bundleno = 9 (0x9), region = 104 }
 0x5de   :  { %930 = vsyncpa [#allocation3], 1 }
 0x5df   :  { %932 = vsyncpa [#allocation3 + $0x1], 1 }
 0x5e0   :  { %933 = vsyncpa [#allocation5], 1 }
 0x5e1   :  { %935 = vsyncpa [#allocation5 + $0x1], 1 }

</bundles_post_ra>
